<compile_context>
chip_gen: v5e
topology: v5e:2x2
jax: 0.10.0
libtpu: 0.0.40
codegen_flags: <defaults>
</compile_context>

<pallas_src>
import functools
import math

import jax
import jax.numpy as jnp
from jax import lax
from jax.experimental import pallas as pl
from jax.experimental.pallas import tpu as pltpu


# ---------------------------------------------------------------------------
# Fused kernel: dense projections + folded location energy + per-head SDPA
# ---------------------------------------------------------------------------
def _fused_kernel(q_ref, vcat_ref, wq_ref, wv_ref, bq_ref, bv_ref,
                  ctx_ref, attn_ref, *, num_heads):
    bblk, q_len, hidden = q_ref.shape
    v_len = vcat_ref.shape[1]
    kcat = vcat_ref.shape[2]
    dim = hidden // num_heads

    # --- dense projections for the whole batch block: one matmul each -----
    q2 = q_ref[...].reshape(bblk * q_len, hidden)
    v2 = vcat_ref[...].reshape(bblk * v_len, kcat)
    # scale already folded into wq/bq on the host
    qp = jnp.dot(q2, wq_ref[...], preferred_element_type=jnp.float32) + bq_ref[...]
    # Wv^T and the block-diagonal conv∘loc matrix share one matmul (K = kcat)
    vp = jnp.dot(v2, wv_ref[...], preferred_element_type=jnp.float32) + bv_ref[...]

    # --- per-head scaled-dot-product attention (inherently block-diagonal) -
    for bi in range(bblk):
        qp_b = qp[bi * q_len:(bi + 1) * q_len]          # (q_len, hidden)
        vp_b = vp[bi * v_len:(bi + 1) * v_len]          # (v_len, hidden)
        for h in range(num_heads):
            qh = qp_b[:, h * dim:(h + 1) * dim]         # (q_len, dim) lane slice
            vh = vp_b[:, h * dim:(h + 1) * dim]         # (v_len, dim) lane slice
            s = jnp.einsum('qd,kd->qk', qh, vh,
                           preferred_element_type=jnp.float32)   # (q_len, v_len)
            s = s - jnp.max(s, axis=-1, keepdims=True)
            e = jnp.exp(s)
            denom = jnp.sum(e, axis=-1, keepdims=True)
            inv = pl.reciprocal(denom, approx=True)     # EUP slot (free here)
            inv = inv * (2.0 - denom * inv)             # one Newton step -> f32 exact
            attn = e * inv                              # (q_len, v_len)
            ctx = jnp.dot(attn, vh,
                          preferred_element_type=jnp.float32)    # (q_len, dim)
            attn_ref[h, bi] = attn                      # head-major attn out
            # static lane-slice store; no in-kernel concat/relayout
            ctx_ref[bi, :, h * dim:(h + 1) * dim] = ctx


def _batch_block_size(B):
    """Generation-aware grid choice.

    v7x has two TensorCores per chip -> keep grid=(B,) so the batch shards
    across cores (dimension_semantics=('parallel',)).  v5e/v6e have one TC, so
    the batch grid is just a serial loop costing ~0.35us/step -> collapse it
    into a single grid step when B is small.
    """
    try:
        kind = jax.devices()[0].device_kind.lower()
    except Exception:  # pragma: no cover - defensive
        kind = ""
    if "v7" in kind:
        return 1
    return B if B <= 8 else 1


# ---------------------------------------------------------------------------
# Wrapper
# ---------------------------------------------------------------------------
def customizing_attention(params, query, value, last_attn, num_heads):
    B, q_len, hidden = query.shape
    v_len = value.shape[1]
    dim = hidden // num_heads
    C = params["wconv"].shape[0]
    f32 = jnp.float32
    inv_sqrt_dim = 1.0 / math.sqrt(dim)

    # ---- host-side, one-time parameter folding (no activation traffic) ----
    # softmax scale folded into the query projection (exact static fold)
    wq_s = params["wq"].T * inv_sqrt_dim                        # (hidden, hidden)
    bq_s = (params["bq"] * inv_sqrt_dim).reshape(1, hidden)

    # conv1d(1->C,k=3,pad=1) ∘ loc_proj(C->dim)  ==  (3, dim) matrix + dim bias
    wconv2 = params["wconv"].reshape(C, 3)
    m = jnp.matmul(wconv2.T, params["wloc"].T, precision="highest")      # (3, dim)
    bconst = jnp.matmul(params["wloc"], params["bconv"], precision="highest")  # (dim,)
    # block-diagonal (3*heads, hidden): head h's 3 rows feed cols h*dim..h*dim+dim
    mbd = jnp.kron(jnp.eye(num_heads, dtype=f32), m)            # (3*heads, hidden)
    # combined value-side weight: [Wv^T ; M_blockdiag]  -> single K-matmul
    wv_cat = jnp.concatenate([params["wv"].T, mbd], axis=0)     # (hidden+3h, hidden)
    bv = (params["bias"] + jnp.tile(bconst, num_heads)).reshape(1, hidden)

    # Shifted, zero-padded previous alignment, laid out as (B, v_len, 3*heads)
    # so the location energy rides in the same matmul as the value projection.
    la = last_attn.reshape(B, num_heads, v_len)
    lap = jnp.pad(la, ((0, 0), (0, 0), (1, 1)))
    lash = jnp.stack([lap[..., 0:v_len], lap[..., 1:v_len + 1],
                      lap[..., 2:v_len + 2]], axis=-1)          # (B, h, v, 3)
    lash = lash.transpose(0, 2, 1, 3).reshape(B, v_len, 3 * num_heads)
    vcat = jnp.concatenate([value, lash], axis=-1)              # (B, v, hidden+3h)
    kcat = hidden + 3 * num_heads

    bblk = _batch_block_size(B)
    grid = (B // bblk,)

    flops = 2 * B * (q_len * hidden * hidden
                     + v_len * kcat * hidden
                     + 2 * num_heads * q_len * v_len * dim)
    bytes_accessed = 4 * (query.size + vcat.size + wq_s.size + wv_cat.size
                          + bq_s.size + bv.size
                          + B * q_len * hidden
                          + num_heads * B * q_len * v_len)
    cost = pl.CostEstimate(flops=flops,
                           transcendentals=B * num_heads * q_len * v_len,
                           bytes_accessed=bytes_accessed)

    # NOTE: last output dims are only `hidden`(32)/`v_len`(8) lanes wide, so
    # stores are masked; fine at these shapes (see review) — revisit if q_len /
    # v_len scale up (emit a lane-dense attn slab instead).
    ctx, attn = pl.pallas_call(
        functools.partial(_fused_kernel, num_heads=num_heads),
        out_shape=(jax.ShapeDtypeStruct((B, q_len, hidden), f32),
                   jax.ShapeDtypeStruct((num_heads, B, q_len, v_len), f32)),
        grid=grid,
        in_specs=[
            pl.BlockSpec((bblk, q_len, hidden), lambda b: (b, 0, 0)),   # query
            pl.BlockSpec((bblk, v_len, kcat), lambda b: (b, 0, 0)),     # [value|lash]
            pl.BlockSpec((hidden, hidden), lambda b: (0, 0)),           # Wq^T * scale
            pl.BlockSpec((kcat, hidden), lambda b: (0, 0)),             # [Wv^T; Mbd]
            pl.BlockSpec((1, hidden), lambda b: (0, 0)),                # bq * scale
            pl.BlockSpec((1, hidden), lambda b: (0, 0)),                # bias + loc bias
        ],
        out_specs=(pl.BlockSpec((bblk, q_len, hidden), lambda b: (b, 0, 0)),
                   pl.BlockSpec((num_heads, bblk, q_len, v_len),
                                lambda b: (0, b, 0, 0))),
        compiler_params=pltpu.CompilerParams(dimension_semantics=("parallel",)),
        cost_estimate=cost,
    )(query, vcat, wq_s, wv_cat, bq_s, bv)

    # (heads, B, q_len, v_len) -> (heads*B, q_len, v_len): pure reshape, matches
    # torch's permute(2,0,1,3).contiguous().view(-1, q_len, v_len) ordering.
    attn = attn.reshape(num_heads * B, q_len, v_len)
    return ctx, jnp.squeeze(attn)   # mimic torch .squeeze()


# ---------------------------------------------------------------------------
# Pure-JAX reference (mirrors the PyTorch forward)
# ---------------------------------------------------------------------------
def reference(params, query, value, last_attn, num_heads):
    B, q_len, hidden = query.shape
    v_len = value.shape[1]
    dim = hidden // num_heads

    x = last_attn[:, None, :]                              # (B*h, 1, v_len)
    conv = lax.conv_general_dilated(
        x, params["wconv"], window_strides=(1,), padding=((1, 1),),
        dimension_numbers=("NCH", "OIH", "NCH")) + params["bconv"][None, :, None]
    cf = conv.reshape(B, num_heads, -1, v_len).transpose(0, 1, 3, 2)   # (B,h,v,C)
    loc = jnp.einsum("bhvc,dc->bhvd", cf, params["wloc"])
    loc_e = loc.transpose(0, 2, 1, 3).reshape(B, v_len, hidden)

    qp = query @ params["wq"].T + params["bq"]
    vp = value @ params["wv"].T + loc_e + params["bias"]
    qh = qp.reshape(B, q_len, num_heads, dim).transpose(2, 0, 1, 3).reshape(-1, q_len, dim)
    vh = vp.reshape(B, v_len, num_heads, dim).transpose(2, 0, 1, 3).reshape(-1, v_len, dim)

    score = jnp.einsum("nqd,nkd->nqk", qh, vh) / math.sqrt(dim)
    attn = jax.nn.softmax(score, axis=-1)
    ctx = jnp.einsum("nqk,nkd->nqd", attn, vh)
    ctx = ctx.reshape(num_heads, B, q_len, dim).transpose(1, 2, 0, 3).reshape(B, q_len, -1)
    return ctx, jnp.squeeze(attn)


# ---------------------------------------------------------------------------
# Deterministic parameter init (shapes from the module __init__)
# ---------------------------------------------------------------------------
def make_params(key, hidden, num_heads, conv_out):
    dim = hidden // num_heads
    ks = jax.random.split(key, 7)
    u = lambda k, s: jax.random.uniform(k, s, jnp.float32, -0.1, 0.1)
    return {
        "wq": u(ks[0], (hidden, hidden)),        # query_proj.weight
        "bq": u(ks[1], (hidden,)),               # query_proj.bias
        "wv": u(ks[2], (hidden, hidden)),        # value_proj.weight (no bias)
        "wconv": u(ks[3], (conv_out, 1, 3)),     # conv1d.weight
        "bconv": u(ks[4], (conv_out,)),          # conv1d.bias
        "wloc": u(ks[5], (dim, conv_out)),       # loc_proj.weight (no bias)
        "bias": u(ks[6], (hidden,)),             # extra learnable bias
    }


if __name__ == "__main__":
    B, q_len, v_len = 2, 1, 8
    hidden, num_heads, conv_out = 32, 4, 10

    key = jax.random.PRNGKey(0)
    kq, kv, ka, kp = jax.random.split(key, 4)
    query = jax.random.normal(kq, (B, q_len, hidden), jnp.float32)
    value = jax.random.normal(kv, (B, v_len, hidden), jnp.float32)
    last_attn = jax.nn.softmax(
        jax.random.normal(ka, (B * num_heads, v_len), jnp.float32), axis=-1)

    params = make_params(kp, hidden, num_heads, conv_out)

    ctx, attn = customizing_attention(params, query, value, last_attn, num_heads)
    ctx = jax.block_until_ready(ctx)
    attn = jax.block_until_ready(attn)

    ctx_ref, attn_ref = reference(params, query, value, last_attn, num_heads)
    assert ctx.shape == (B, q_len, hidden)
    assert attn.shape == attn_ref.shape
    assert jnp.allclose(ctx, ctx_ref, rtol=1e-4, atol=1e-5), "context mismatch"
    assert jnp.allclose(attn, attn_ref, rtol=1e-4, atol=1e-5), "attn mismatch"

    print("KERNEL_OK")
</pallas_src>

<mosaic_0001>
module attributes {stable_mosaic.version = 11 : i64} {
  func.func @_fused_kernel(%arg0: i32, %arg1: memref<2x1x32xf32, #tpu.memory_space<vmem>>, %arg2: memref<2x8x44xf32, #tpu.memory_space<vmem>>, %arg3: memref<32x32xf32, #tpu.memory_space<vmem>>, %arg4: memref<44x32xf32, #tpu.memory_space<vmem>>, %arg5: memref<1x32xf32, #tpu.memory_space<vmem>>, %arg6: memref<1x32xf32, #tpu.memory_space<vmem>>, %arg7: memref<2x1x32xf32, #tpu.memory_space<vmem>>, %arg8: memref<4x2x1x8xf32, #tpu.memory_space<vmem>>) attributes {dimension_semantics = [#tpu.dimension_semantics<parallel>], iteration_bounds = array<i64: 1>, scalar_prefetch = 0 : i64, scratch_operands = 0 : i64, tpu.core_type = #tpu.core_type<tc>, window_params = [{transform_indices = @transform_0, window_bounds = array<i64: 2, 1, 32>}, {transform_indices = @transform_1, window_bounds = array<i64: 2, 8, 44>}, {pipeline_mode = #tpu.pipeline_mode<synchronous>, transform_indices = @transform_2, window_bounds = array<i64: 32, 32>}, {pipeline_mode = #tpu.pipeline_mode<synchronous>, transform_indices = @transform_3, window_bounds = array<i64: 44, 32>}, {pipeline_mode = #tpu.pipeline_mode<synchronous>, transform_indices = @transform_4, window_bounds = array<i64: 1, 32>}, {pipeline_mode = #tpu.pipeline_mode<synchronous>, transform_indices = @transform_5, window_bounds = array<i64: 1, 32>}, {transform_indices = @transform_6, window_bounds = array<i64: 2, 1, 32>}, {transform_indices = @transform_7, window_bounds = array<i64: 4, 2, 1, 8>}]} {
    %c0 = arith.constant 0 : index
    %c0_0 = arith.constant 0 : index
    %c0_1 = arith.constant 0 : index
    %0 = vector.load %arg1[%c0, %c0_0, %c0_1] : memref<2x1x32xf32, #tpu.memory_space<vmem>>, vector<2x1x32xf32>
    %1 = vector.shape_cast %0 : vector<2x1x32xf32> to vector<2x32xf32>
    %c0_2 = arith.constant 0 : index
    %c0_3 = arith.constant 0 : index
    %c0_4 = arith.constant 0 : index
    %2 = vector.load %arg2[%c0_2, %c0_3, %c0_4] : memref<2x8x44xf32, #tpu.memory_space<vmem>>, vector<2x8x44xf32>
    %3 = vector.shape_cast %2 : vector<2x8x44xf32> to vector<16x44xf32>
    %c0_5 = arith.constant 0 : index
    %c0_6 = arith.constant 0 : index
    %4 = vector.load %arg3[%c0_5, %c0_6] : memref<32x32xf32, #tpu.memory_space<vmem>>, vector<32x32xf32>
    %cst = arith.constant dense<0.000000e+00> : vector<2x32xf32>
    %5 = tpu.matmul %1, %4, %cst {dimension_numbers = #tpu.dot_dimension_numbers<[1], [0], [0], [1], [0, 0, 1, 1], [], []>} : vector<2x32xf32>, vector<32x32xf32>, vector<2x32xf32> -> vector<2x32xf32>
    %c0_7 = arith.constant 0 : index
    %c0_8 = arith.constant 0 : index
    %6 = vector.load %arg5[%c0_7, %c0_8] : memref<1x32xf32, #tpu.memory_space<vmem>>, vector<1x32xf32>
    %7 = vector.broadcast %6 : vector<1x32xf32> to vector<2x32xf32>
    %8 = arith.addf %5, %7 : vector<2x32xf32>
    %c0_9 = arith.constant 0 : index
    %c0_10 = arith.constant 0 : index
    %9 = vector.load %arg4[%c0_9, %c0_10] : memref<44x32xf32, #tpu.memory_space<vmem>>, vector<44x32xf32>
    %cst_11 = arith.constant dense<0.000000e+00> : vector<16x32xf32>
    %10 = tpu.matmul %3, %9, %cst_11 {dimension_numbers = #tpu.dot_dimension_numbers<[1], [0], [0], [1], [0, 0, 1, 1], [], []>} : vector<16x44xf32>, vector<44x32xf32>, vector<16x32xf32> -> vector<16x32xf32>
    %c0_12 = arith.constant 0 : index
    %c0_13 = arith.constant 0 : index
    %11 = vector.load %arg6[%c0_12, %c0_13] : memref<1x32xf32, #tpu.memory_space<vmem>>, vector<1x32xf32>
    %12 = vector.broadcast %11 : vector<1x32xf32> to vector<16x32xf32>
    %13 = arith.addf %10, %12 : vector<16x32xf32>
    %14 = vector.extract_strided_slice %8 {offsets = [0, 0], sizes = [1, 32], strides = [1, 1]} : vector<2x32xf32> to vector<1x32xf32>
    %15 = vector.extract_strided_slice %13 {offsets = [0, 0], sizes = [8, 32], strides = [1, 1]} : vector<16x32xf32> to vector<8x32xf32>
    %16 = vector.extract_strided_slice %14 {offsets = [0, 0], sizes = [1, 8], strides = [1, 1]} : vector<1x32xf32> to vector<1x8xf32>
    %17 = vector.extract_strided_slice %15 {offsets = [0, 0], sizes = [8, 8], strides = [1, 1]} : vector<8x32xf32> to vector<8x8xf32>
    "tpu.trace_start"() <{level = 10 : i32, message = "qd,kd->qk"}> : () -> ()
    %cst_14 = arith.constant dense<0.000000e+00> : vector<1x8xf32>
    %18 = tpu.matmul %16, %17, %cst_14 {dimension_numbers = #tpu.dot_dimension_numbers<[1], [1], [0], [0], [0, 0, 1, 0], [], []>} : vector<1x8xf32>, vector<8x8xf32>, vector<1x8xf32> -> vector<1x8xf32>
    "tpu.trace_stop"() : () -> ()
    %cst_15 = arith.constant dense<0xFF800000> : vector<1xf32>
    %19 = vector.multi_reduction <maximumf>, %18, %cst_15 [1] : vector<1x8xf32> to vector<1xf32>
    %20 = vector.shape_cast %19 : vector<1xf32> to vector<1x1xf32>
    %21 = vector.broadcast %20 : vector<1x1xf32> to vector<1x8xf32>
    %22 = arith.subf %18, %21 : vector<1x8xf32>
    %23 = math.exp %22 : vector<1x8xf32>
    %cst_16 = arith.constant dense<0.000000e+00> : vector<1xf32>
    %24 = vector.multi_reduction <add>, %23, %cst_16 [1] : vector<1x8xf32> to vector<1xf32>
    %25 = vector.shape_cast %24 : vector<1xf32> to vector<1x1xf32>
    %26 = tpu.reciprocal %25 {approx = true} : vector<1x1xf32> -> vector<1x1xf32>
    %27 = arith.mulf %25, %26 : vector<1x1xf32>
    %cst_17 = arith.constant 2.000000e+00 : f32
    %28 = vector.broadcast %cst_17 : f32 to vector<1x1xf32>
    %29 = arith.subf %28, %27 : vector<1x1xf32>
    %30 = arith.mulf %26, %29 : vector<1x1xf32>
    %31 = vector.broadcast %30 : vector<1x1xf32> to vector<1x8xf32>
    %32 = arith.mulf %23, %31 : vector<1x8xf32>
    %cst_18 = arith.constant dense<0.000000e+00> : vector<1x8xf32>
    %33 = tpu.matmul %32, %17, %cst_18 {dimension_numbers = #tpu.dot_dimension_numbers<[1], [0], [0], [1], [0, 0, 1, 1], [], []>} : vector<1x8xf32>, vector<8x8xf32>, vector<1x8xf32> -> vector<1x8xf32>
    %c0_19 = arith.constant 0 : index
    %c0_20 = arith.constant 0 : index
    %c0_21 = arith.constant 0 : index
    %c0_22 = arith.constant 0 : index
    %34 = vector.load %arg8[%c0_19, %c0_20, %c0_21, %c0_22] : memref<4x2x1x8xf32, #tpu.memory_space<vmem>>, vector<1x1x1x8xf32>
    %35 = vector.shape_cast %34 : vector<1x1x1x8xf32> to vector<1x8xf32>
    %36 = vector.shape_cast %32 : vector<1x8xf32> to vector<1x1x1x8xf32>
    tpu.vector_store %arg8[%c0_19, %c0_20, %c0_21, %c0_22], %36 {strides = array<i32>} : memref<4x2x1x8xf32, #tpu.memory_space<vmem>>, vector<1x1x1x8xf32>,
    %c0_23 = arith.constant 0 : index
    %c0_24 = arith.constant 0 : index
    %c0_25 = arith.constant 0 : index
    %37 = vector.load %arg7[%c0_23, %c0_24, %c0_25] : memref<2x1x32xf32, #tpu.memory_space<vmem>>, vector<1x1x8xf32>
    %38 = vector.shape_cast %37 : vector<1x1x8xf32> to vector<1x8xf32>
    %39 = vector.shape_cast %33 : vector<1x8xf32> to vector<1x1x8xf32>
    tpu.vector_store %arg7[%c0_23, %c0_24, %c0_25], %39 {strides = array<i32>} : memref<2x1x32xf32, #tpu.memory_space<vmem>>, vector<1x1x8xf32>,
    %40 = vector.extract_strided_slice %14 {offsets = [0, 8], sizes = [1, 8], strides = [1, 1]} : vector<1x32xf32> to vector<1x8xf32>
    %41 = vector.extract_strided_slice %15 {offsets = [0, 8], sizes = [8, 8], strides = [1, 1]} : vector<8x32xf32> to vector<8x8xf32>
    "tpu.trace_start"() <{level = 10 : i32, message = "qd,kd->qk"}> : () -> ()
    %cst_26 = arith.constant dense<0.000000e+00> : vector<1x8xf32>
    %42 = tpu.matmul %40, %41, %cst_26 {dimension_numbers = #tpu.dot_dimension_numbers<[1], [1], [0], [0], [0, 0, 1, 0], [], []>} : vector<1x8xf32>, vector<8x8xf32>, vector<1x8xf32> -> vector<1x8xf32>
    "tpu.trace_stop"() : () -> ()
    %cst_27 = arith.constant dense<0xFF800000> : vector<1xf32>
    %43 = vector.multi_reduction <maximumf>, %42, %cst_27 [1] : vector<1x8xf32> to vector<1xf32>
    %44 = vector.shape_cast %43 : vector<1xf32> to vector<1x1xf32>
    %45 = vector.broadcast %44 : vector<1x1xf32> to vector<1x8xf32>
    %46 = arith.subf %42, %45 : vector<1x8xf32>
    %47 = math.exp %46 : vector<1x8xf32>
    %cst_28 = arith.constant dense<0.000000e+00> : vector<1xf32>
    %48 = vector.multi_reduction <add>, %47, %cst_28 [1] : vector<1x8xf32> to vector<1xf32>
    %49 = vector.shape_cast %48 : vector<1xf32> to vector<1x1xf32>
    %50 = tpu.reciprocal %49 {approx = true} : vector<1x1xf32> -> vector<1x1xf32>
    %51 = arith.mulf %49, %50 : vector<1x1xf32>
    %cst_29 = arith.constant 2.000000e+00 : f32
    %52 = vector.broadcast %cst_29 : f32 to vector<1x1xf32>
    %53 = arith.subf %52, %51 : vector<1x1xf32>
    %54 = arith.mulf %50, %53 : vector<1x1xf32>
    %55 = vector.broadcast %54 : vector<1x1xf32> to vector<1x8xf32>
    %56 = arith.mulf %47, %55 : vector<1x8xf32>
    %cst_30 = arith.constant dense<0.000000e+00> : vector<1x8xf32>
    %57 = tpu.matmul %56, %41, %cst_30 {dimension_numbers = #tpu.dot_dimension_numbers<[1], [0], [0], [1], [0, 0, 1, 1], [], []>} : vector<1x8xf32>, vector<8x8xf32>, vector<1x8xf32> -> vector<1x8xf32>
    %c1 = arith.constant 1 : index
    %c0_31 = arith.constant 0 : index
    %c0_32 = arith.constant 0 : index
    %c0_33 = arith.constant 0 : index
    %58 = vector.load %arg8[%c1, %c0_31, %c0_32, %c0_33] : memref<4x2x1x8xf32, #tpu.memory_space<vmem>>, vector<1x1x1x8xf32>
    %59 = vector.shape_cast %58 : vector<1x1x1x8xf32> to vector<1x8xf32>
    %60 = vector.shape_cast %56 : vector<1x8xf32> to vector<1x1x1x8xf32>
    tpu.vector_store %arg8[%c1, %c0_31, %c0_32, %c0_33], %60 {strides = array<i32>} : memref<4x2x1x8xf32, #tpu.memory_space<vmem>>, vector<1x1x1x8xf32>,
    %c0_34 = arith.constant 0 : index
    %c0_35 = arith.constant 0 : index
    %c8 = arith.constant 8 : index
    %61 = vector.load %arg7[%c0_34, %c0_35, %c8] : memref<2x1x32xf32, #tpu.memory_space<vmem>>, vector<1x1x8xf32>
    %62 = vector.shape_cast %61 : vector<1x1x8xf32> to vector<1x8xf32>
    %63 = vector.shape_cast %57 : vector<1x8xf32> to vector<1x1x8xf32>
    tpu.vector_store %arg7[%c0_34, %c0_35, %c8], %63 {strides = array<i32>} : memref<2x1x32xf32, #tpu.memory_space<vmem>>, vector<1x1x8xf32>,
    %64 = vector.extract_strided_slice %14 {offsets = [0, 16], sizes = [1, 8], strides = [1, 1]} : vector<1x32xf32> to vector<1x8xf32>
    %65 = vector.extract_strided_slice %15 {offsets = [0, 16], sizes = [8, 8], strides = [1, 1]} : vector<8x32xf32> to vector<8x8xf32>
    "tpu.trace_start"() <{level = 10 : i32, message = "qd,kd->qk"}> : () -> ()
    %cst_36 = arith.constant dense<0.000000e+00> : vector<1x8xf32>
    %66 = tpu.matmul %64, %65, %cst_36 {dimension_numbers = #tpu.dot_dimension_numbers<[1], [1], [0], [0], [0, 0, 1, 0], [], []>} : vector<1x8xf32>, vector<8x8xf32>, vector<1x8xf32> -> vector<1x8xf32>
    "tpu.trace_stop"() : () -> ()
    %cst_37 = arith.constant dense<0xFF800000> : vector<1xf32>
    %67 = vector.multi_reduction <maximumf>, %66, %cst_37 [1] : vector<1x8xf32> to vector<1xf32>
    %68 = vector.shape_cast %67 : vector<1xf32> to vector<1x1xf32>
    %69 = vector.broadcast %68 : vector<1x1xf32> to vector<1x8xf32>
    %70 = arith.subf %66, %69 : vector<1x8xf32>
    %71 = math.exp %70 : vector<1x8xf32>
    %cst_38 = arith.constant dense<0.000000e+00> : vector<1xf32>
    %72 = vector.multi_reduction <add>, %71, %cst_38 [1] : vector<1x8xf32> to vector<1xf32>
    %73 = vector.shape_cast %72 : vector<1xf32> to vector<1x1xf32>
    %74 = tpu.reciprocal %73 {approx = true} : vector<1x1xf32> -> vector<1x1xf32>
    %75 = arith.mulf %73, %74 : vector<1x1xf32>
    %cst_39 = arith.constant 2.000000e+00 : f32
    %76 = vector.broadcast %cst_39 : f32 to vector<1x1xf32>
    %77 = arith.subf %76, %75 : vector<1x1xf32>
    %78 = arith.mulf %74, %77 : vector<1x1xf32>
    %79 = vector.broadcast %78 : vector<1x1xf32> to vector<1x8xf32>
    %80 = arith.mulf %71, %79 : vector<1x8xf32>
    %cst_40 = arith.constant dense<0.000000e+00> : vector<1x8xf32>
    %81 = tpu.matmul %80, %65, %cst_40 {dimension_numbers = #tpu.dot_dimension_numbers<[1], [0], [0], [1], [0, 0, 1, 1], [], []>} : vector<1x8xf32>, vector<8x8xf32>, vector<1x8xf32> -> vector<1x8xf32>
    %c2 = arith.constant 2 : index
    %c0_41 = arith.constant 0 : index
    %c0_42 = arith.constant 0 : index
    %c0_43 = arith.constant 0 : index
    %82 = vector.load %arg8[%c2, %c0_41, %c0_42, %c0_43] : memref<4x2x1x8xf32, #tpu.memory_space<vmem>>, vector<1x1x1x8xf32>
    %83 = vector.shape_cast %82 : vector<1x1x1x8xf32> to vector<1x8xf32>
    %84 = vector.shape_cast %80 : vector<1x8xf32> to vector<1x1x1x8xf32>
    tpu.vector_store %arg8[%c2, %c0_41, %c0_42, %c0_43], %84 {strides = array<i32>} : memref<4x2x1x8xf32, #tpu.memory_space<vmem>>, vector<1x1x1x8xf32>,
    %c0_44 = arith.constant 0 : index
    %c0_45 = arith.constant 0 : index
    %c16 = arith.constant 16 : index
    %85 = vector.load %arg7[%c0_44, %c0_45, %c16] : memref<2x1x32xf32, #tpu.memory_space<vmem>>, vector<1x1x8xf32>
    %86 = vector.shape_cast %85 : vector<1x1x8xf32> to vector<1x8xf32>
    %87 = vector.shape_cast %81 : vector<1x8xf32> to vector<1x1x8xf32>
    tpu.vector_store %arg7[%c0_44, %c0_45, %c16], %87 {strides = array<i32>} : memref<2x1x32xf32, #tpu.memory_space<vmem>>, vector<1x1x8xf32>,
    %88 = vector.extract_strided_slice %14 {offsets = [0, 24], sizes = [1, 8], strides = [1, 1]} : vector<1x32xf32> to vector<1x8xf32>
    %89 = vector.extract_strided_slice %15 {offsets = [0, 24], sizes = [8, 8], strides = [1, 1]} : vector<8x32xf32> to vector<8x8xf32>
    "tpu.trace_start"() <{level = 10 : i32, message = "qd,kd->qk"}> : () -> ()
    %cst_46 = arith.constant dense<0.000000e+00> : vector<1x8xf32>
    %90 = tpu.matmul %88, %89, %cst_46 {dimension_numbers = #tpu.dot_dimension_numbers<[1], [1], [0], [0], [0, 0, 1, 0], [], []>} : vector<1x8xf32>, vector<8x8xf32>, vector<1x8xf32> -> vector<1x8xf32>
    "tpu.trace_stop"() : () -> ()
    %cst_47 = arith.constant dense<0xFF800000> : vector<1xf32>
    %91 = vector.multi_reduction <maximumf>, %90, %cst_47 [1] : vector<1x8xf32> to vector<1xf32>
    %92 = vector.shape_cast %91 : vector<1xf32> to vector<1x1xf32>
    %93 = vector.broadcast %92 : vector<1x1xf32> to vector<1x8xf32>
    %94 = arith.subf %90, %93 : vector<1x8xf32>
    %95 = math.exp %94 : vector<1x8xf32>
    %cst_48 = arith.constant dense<0.000000e+00> : vector<1xf32>
    %96 = vector.multi_reduction <add>, %95, %cst_48 [1] : vector<1x8xf32> to vector<1xf32>
    %97 = vector.shape_cast %96 : vector<1xf32> to vector<1x1xf32>
    %98 = tpu.reciprocal %97 {approx = true} : vector<1x1xf32> -> vector<1x1xf32>
    %99 = arith.mulf %97, %98 : vector<1x1xf32>
    %cst_49 = arith.constant 2.000000e+00 : f32
    %100 = vector.broadcast %cst_49 : f32 to vector<1x1xf32>
    %101 = arith.subf %100, %99 : vector<1x1xf32>
    %102 = arith.mulf %98, %101 : vector<1x1xf32>
    %103 = vector.broadcast %102 : vector<1x1xf32> to vector<1x8xf32>
    %104 = arith.mulf %95, %103 : vector<1x8xf32>
    %cst_50 = arith.constant dense<0.000000e+00> : vector<1x8xf32>
    %105 = tpu.matmul %104, %89, %cst_50 {dimension_numbers = #tpu.dot_dimension_numbers<[1], [0], [0], [1], [0, 0, 1, 1], [], []>} : vector<1x8xf32>, vector<8x8xf32>, vector<1x8xf32> -> vector<1x8xf32>
    %c3 = arith.constant 3 : index
    %c0_51 = arith.constant 0 : index
    %c0_52 = arith.constant 0 : index
    %c0_53 = arith.constant 0 : index
    %106 = vector.load %arg8[%c3, %c0_51, %c0_52, %c0_53] : memref<4x2x1x8xf32, #tpu.memory_space<vmem>>, vector<1x1x1x8xf32>
    %107 = vector.shape_cast %106 : vector<1x1x1x8xf32> to vector<1x8xf32>
    %108 = vector.shape_cast %104 : vector<1x8xf32> to vector<1x1x1x8xf32>
    tpu.vector_store %arg8[%c3, %c0_51, %c0_52, %c0_53], %108 {strides = array<i32>} : memref<4x2x1x8xf32, #tpu.memory_space<vmem>>, vector<1x1x1x8xf32>,
    %c0_54 = arith.constant 0 : index
    %c0_55 = arith.constant 0 : index
    %c24 = arith.constant 24 : index
    %109 = vector.load %arg7[%c0_54, %c0_55, %c24] : memref<2x1x32xf32, #tpu.memory_space<vmem>>, vector<1x1x8xf32>
    %110 = vector.shape_cast %109 : vector<1x1x8xf32> to vector<1x8xf32>
    %111 = vector.shape_cast %105 : vector<1x8xf32> to vector<1x1x8xf32>
    tpu.vector_store %arg7[%c0_54, %c0_55, %c24], %111 {strides = array<i32>} : memref<2x1x32xf32, #tpu.memory_space<vmem>>, vector<1x1x8xf32>,
    %112 = vector.extract_strided_slice %8 {offsets = [1, 0], sizes = [1, 32], strides = [1, 1]} : vector<2x32xf32> to vector<1x32xf32>
    %113 = vector.extract_strided_slice %13 {offsets = [8, 0], sizes = [8, 32], strides = [1, 1]} : vector<16x32xf32> to vector<8x32xf32>
    %114 = vector.extract_strided_slice %112 {offsets = [0, 0], sizes = [1, 8], strides = [1, 1]} : vector<1x32xf32> to vector<1x8xf32>
    %115 = vector.extract_strided_slice %113 {offsets = [0, 0], sizes = [8, 8], strides = [1, 1]} : vector<8x32xf32> to vector<8x8xf32>
    "tpu.trace_start"() <{level = 10 : i32, message = "qd,kd->qk"}> : () -> ()
    %cst_56 = arith.constant dense<0.000000e+00> : vector<1x8xf32>
    %116 = tpu.matmul %114, %115, %cst_56 {dimension_numbers = #tpu.dot_dimension_numbers<[1], [1], [0], [0], [0, 0, 1, 0], [], []>} : vector<1x8xf32>, vector<8x8xf32>, vector<1x8xf32> -> vector<1x8xf32>
    "tpu.trace_stop"() : () -> ()
    %cst_57 = arith.constant dense<0xFF800000> : vector<1xf32>
    %117 = vector.multi_reduction <maximumf>, %116, %cst_57 [1] : vector<1x8xf32> to vector<1xf32>
    %118 = vector.shape_cast %117 : vector<1xf32> to vector<1x1xf32>
    %119 = vector.broadcast %118 : vector<1x1xf32> to vector<1x8xf32>
    %120 = arith.subf %116, %119 : vector<1x8xf32>
    %121 = math.exp %120 : vector<1x8xf32>
    %cst_58 = arith.constant dense<0.000000e+00> : vector<1xf32>
    %122 = vector.multi_reduction <add>, %121, %cst_58 [1] : vector<1x8xf32> to vector<1xf32>
    %123 = vector.shape_cast %122 : vector<1xf32> to vector<1x1xf32>
    %124 = tpu.reciprocal %123 {approx = true} : vector<1x1xf32> -> vector<1x1xf32>
    %125 = arith.mulf %123, %124 : vector<1x1xf32>
    %cst_59 = arith.constant 2.000000e+00 : f32
    %126 = vector.broadcast %cst_59 : f32 to vector<1x1xf32>
    %127 = arith.subf %126, %125 : vector<1x1xf32>
    %128 = arith.mulf %124, %127 : vector<1x1xf32>
    %129 = vector.broadcast %128 : vector<1x1xf32> to vector<1x8xf32>
    %130 = arith.mulf %121, %129 : vector<1x8xf32>
    %cst_60 = arith.constant dense<0.000000e+00> : vector<1x8xf32>
    %131 = tpu.matmul %130, %115, %cst_60 {dimension_numbers = #tpu.dot_dimension_numbers<[1], [0], [0], [1], [0, 0, 1, 1], [], []>} : vector<1x8xf32>, vector<8x8xf32>, vector<1x8xf32> -> vector<1x8xf32>
    %c0_61 = arith.constant 0 : index
    %c1_62 = arith.constant 1 : index
    %c0_63 = arith.constant 0 : index
    %c0_64 = arith.constant 0 : index
    %132 = vector.load %arg8[%c0_61, %c1_62, %c0_63, %c0_64] : memref<4x2x1x8xf32, #tpu.memory_space<vmem>>, vector<1x1x1x8xf32>
    %133 = vector.shape_cast %132 : vector<1x1x1x8xf32> to vector<1x8xf32>
    %134 = vector.shape_cast %130 : vector<1x8xf32> to vector<1x1x1x8xf32>
    tpu.vector_store %arg8[%c0_61, %c1_62, %c0_63, %c0_64], %134 {strides = array<i32>} : memref<4x2x1x8xf32, #tpu.memory_space<vmem>>, vector<1x1x1x8xf32>,
    %c1_65 = arith.constant 1 : index
    %c0_66 = arith.constant 0 : index
    %c0_67 = arith.constant 0 : index
    %135 = vector.load %arg7[%c1_65, %c0_66, %c0_67] : memref<2x1x32xf32, #tpu.memory_space<vmem>>, vector<1x1x8xf32>
    %136 = vector.shape_cast %135 : vector<1x1x8xf32> to vector<1x8xf32>
    %137 = vector.shape_cast %131 : vector<1x8xf32> to vector<1x1x8xf32>
    tpu.vector_store %arg7[%c1_65, %c0_66, %c0_67], %137 {strides = array<i32>} : memref<2x1x32xf32, #tpu.memory_space<vmem>>, vector<1x1x8xf32>,
    %138 = vector.extract_strided_slice %112 {offsets = [0, 8], sizes = [1, 8], strides = [1, 1]} : vector<1x32xf32> to vector<1x8xf32>
    %139 = vector.extract_strided_slice %113 {offsets = [0, 8], sizes = [8, 8], strides = [1, 1]} : vector<8x32xf32> to vector<8x8xf32>
    "tpu.trace_start"() <{level = 10 : i32, message = "qd,kd->qk"}> : () -> ()
    %cst_68 = arith.constant dense<0.000000e+00> : vector<1x8xf32>
    %140 = tpu.matmul %138, %139, %cst_68 {dimension_numbers = #tpu.dot_dimension_numbers<[1], [1], [0], [0], [0, 0, 1, 0], [], []>} : vector<1x8xf32>, vector<8x8xf32>, vector<1x8xf32> -> vector<1x8xf32>
    "tpu.trace_stop"() : () -> ()
    %cst_69 = arith.constant dense<0xFF800000> : vector<1xf32>
    %141 = vector.multi_reduction <maximumf>, %140, %cst_69 [1] : vector<1x8xf32> to vector<1xf32>
    %142 = vector.shape_cast %141 : vector<1xf32> to vector<1x1xf32>
    %143 = vector.broadcast %142 : vector<1x1xf32> to vector<1x8xf32>
    %144 = arith.subf %140, %143 : vector<1x8xf32>
    %145 = math.exp %144 : vector<1x8xf32>
    %cst_70 = arith.constant dense<0.000000e+00> : vector<1xf32>
    %146 = vector.multi_reduction <add>, %145, %cst_70 [1] : vector<1x8xf32> to vector<1xf32>
    %147 = vector.shape_cast %146 : vector<1xf32> to vector<1x1xf32>
    %148 = tpu.reciprocal %147 {approx = true} : vector<1x1xf32> -> vector<1x1xf32>
    %149 = arith.mulf %147, %148 : vector<1x1xf32>
    %cst_71 = arith.constant 2.000000e+00 : f32
    %150 = vector.broadcast %cst_71 : f32 to vector<1x1xf32>
    %151 = arith.subf %150, %149 : vector<1x1xf32>
    %152 = arith.mulf %148, %151 : vector<1x1xf32>
    %153 = vector.broadcast %152 : vector<1x1xf32> to vector<1x8xf32>
    %154 = arith.mulf %145, %153 : vector<1x8xf32>
    %cst_72 = arith.constant dense<0.000000e+00> : vector<1x8xf32>
    %155 = tpu.matmul %154, %139, %cst_72 {dimension_numbers = #tpu.dot_dimension_numbers<[1], [0], [0], [1], [0, 0, 1, 1], [], []>} : vector<1x8xf32>, vector<8x8xf32>, vector<1x8xf32> -> vector<1x8xf32>
    %c1_73 = arith.constant 1 : index
    %c1_74 = arith.constant 1 : index
    %c0_75 = arith.constant 0 : index
    %c0_76 = arith.constant 0 : index
    %156 = vector.load %arg8[%c1_73, %c1_74, %c0_75, %c0_76] : memref<4x2x1x8xf32, #tpu.memory_space<vmem>>, vector<1x1x1x8xf32>
    %157 = vector.shape_cast %156 : vector<1x1x1x8xf32> to vector<1x8xf32>
    %158 = vector.shape_cast %154 : vector<1x8xf32> to vector<1x1x1x8xf32>
    tpu.vector_store %arg8[%c1_73, %c1_74, %c0_75, %c0_76], %158 {strides = array<i32>} : memref<4x2x1x8xf32, #tpu.memory_space<vmem>>, vector<1x1x1x8xf32>,
    %c1_77 = arith.constant 1 : index
    %c0_78 = arith.constant 0 : index
    %c8_79 = arith.constant 8 : index
    %159 = vector.load %arg7[%c1_77, %c0_78, %c8_79] : memref<2x1x32xf32, #tpu.memory_space<vmem>>, vector<1x1x8xf32>
    %160 = vector.shape_cast %159 : vector<1x1x8xf32> to vector<1x8xf32>
    %161 = vector.shape_cast %155 : vector<1x8xf32> to vector<1x1x8xf32>
    tpu.vector_store %arg7[%c1_77, %c0_78, %c8_79], %161 {strides = array<i32>} : memref<2x1x32xf32, #tpu.memory_space<vmem>>, vector<1x1x8xf32>,
    %162 = vector.extract_strided_slice %112 {offsets = [0, 16], sizes = [1, 8], strides = [1, 1]} : vector<1x32xf32> to vector<1x8xf32>
    %163 = vector.extract_strided_slice %113 {offsets = [0, 16], sizes = [8, 8], strides = [1, 1]} : vector<8x32xf32> to vector<8x8xf32>
    "tpu.trace_start"() <{level = 10 : i32, message = "qd,kd->qk"}> : () -> ()
    %cst_80 = arith.constant dense<0.000000e+00> : vector<1x8xf32>
    %164 = tpu.matmul %162, %163, %cst_80 {dimension_numbers = #tpu.dot_dimension_numbers<[1], [1], [0], [0], [0, 0, 1, 0], [], []>} : vector<1x8xf32>, vector<8x8xf32>, vector<1x8xf32> -> vector<1x8xf32>
    "tpu.trace_stop"() : () -> ()
    %cst_81 = arith.constant dense<0xFF800000> : vector<1xf32>
    %165 = vector.multi_reduction <maximumf>, %164, %cst_81 [1] : vector<1x8xf32> to vector<1xf32>
    %166 = vector.shape_cast %165 : vector<1xf32> to vector<1x1xf32>
    %167 = vector.broadcast %166 : vector<1x1xf32> to vector<1x8xf32>
    %168 = arith.subf %164, %167 : vector<1x8xf32>
    %169 = math.exp %168 : vector<1x8xf32>
    %cst_82 = arith.constant dense<0.000000e+00> : vector<1xf32>
    %170 = vector.multi_reduction <add>, %169, %cst_82 [1] : vector<1x8xf32> to vector<1xf32>
    %171 = vector.shape_cast %170 : vector<1xf32> to vector<1x1xf32>
    %172 = tpu.reciprocal %171 {approx = true} : vector<1x1xf32> -> vector<1x1xf32>
    %173 = arith.mulf %171, %172 : vector<1x1xf32>
    %cst_83 = arith.constant 2.000000e+00 : f32
    %174 = vector.broadcast %cst_83 : f32 to vector<1x1xf32>
    %175 = arith.subf %174, %173 : vector<1x1xf32>
    %176 = arith.mulf %172, %175 : vector<1x1xf32>
    %177 = vector.broadcast %176 : vector<1x1xf32> to vector<1x8xf32>
    %178 = arith.mulf %169, %177 : vector<1x8xf32>
    %cst_84 = arith.constant dense<0.000000e+00> : vector<1x8xf32>
    %179 = tpu.matmul %178, %163, %cst_84 {dimension_numbers = #tpu.dot_dimension_numbers<[1], [0], [0], [1], [0, 0, 1, 1], [], []>} : vector<1x8xf32>, vector<8x8xf32>, vector<1x8xf32> -> vector<1x8xf32>
    %c2_85 = arith.constant 2 : index
    %c1_86 = arith.constant 1 : index
    %c0_87 = arith.constant 0 : index
    %c0_88 = arith.constant 0 : index
    %180 = vector.load %arg8[%c2_85, %c1_86, %c0_87, %c0_88] : memref<4x2x1x8xf32, #tpu.memory_space<vmem>>, vector<1x1x1x8xf32>
    %181 = vector.shape_cast %180 : vector<1x1x1x8xf32> to vector<1x8xf32>
    %182 = vector.shape_cast %178 : vector<1x8xf32> to vector<1x1x1x8xf32>
    tpu.vector_store %arg8[%c2_85, %c1_86, %c0_87, %c0_88], %182 {strides = array<i32>} : memref<4x2x1x8xf32, #tpu.memory_space<vmem>>, vector<1x1x1x8xf32>,
    %c1_89 = arith.constant 1 : index
    %c0_90 = arith.constant 0 : index
    %c16_91 = arith.constant 16 : index
    %183 = vector.load %arg7[%c1_89, %c0_90, %c16_91] : memref<2x1x32xf32, #tpu.memory_space<vmem>>, vector<1x1x8xf32>
    %184 = vector.shape_cast %183 : vector<1x1x8xf32> to vector<1x8xf32>
    %185 = vector.shape_cast %179 : vector<1x8xf32> to vector<1x1x8xf32>
    tpu.vector_store %arg7[%c1_89, %c0_90, %c16_91], %185 {strides = array<i32>} : memref<2x1x32xf32, #tpu.memory_space<vmem>>, vector<1x1x8xf32>,
    %186 = vector.extract_strided_slice %112 {offsets = [0, 24], sizes = [1, 8], strides = [1, 1]} : vector<1x32xf32> to vector<1x8xf32>
    %187 = vector.extract_strided_slice %113 {offsets = [0, 24], sizes = [8, 8], strides = [1, 1]} : vector<8x32xf32> to vector<8x8xf32>
    "tpu.trace_start"() <{level = 10 : i32, message = "qd,kd->qk"}> : () -> ()
    %cst_92 = arith.constant dense<0.000000e+00> : vector<1x8xf32>
    %188 = tpu.matmul %186, %187, %cst_92 {dimension_numbers = #tpu.dot_dimension_numbers<[1], [1], [0], [0], [0, 0, 1, 0], [], []>} : vector<1x8xf32>, vector<8x8xf32>, vector<1x8xf32> -> vector<1x8xf32>
    "tpu.trace_stop"() : () -> ()
    %cst_93 = arith.constant dense<0xFF800000> : vector<1xf32>
    %189 = vector.multi_reduction <maximumf>, %188, %cst_93 [1] : vector<1x8xf32> to vector<1xf32>
    %190 = vector.shape_cast %189 : vector<1xf32> to vector<1x1xf32>
    %191 = vector.broadcast %190 : vector<1x1xf32> to vector<1x8xf32>
    %192 = arith.subf %188, %191 : vector<1x8xf32>
    %193 = math.exp %192 : vector<1x8xf32>
    %cst_94 = arith.constant dense<0.000000e+00> : vector<1xf32>
    %194 = vector.multi_reduction <add>, %193, %cst_94 [1] : vector<1x8xf32> to vector<1xf32>
    %195 = vector.shape_cast %194 : vector<1xf32> to vector<1x1xf32>
    %196 = tpu.reciprocal %195 {approx = true} : vector<1x1xf32> -> vector<1x1xf32>
    %197 = arith.mulf %195, %196 : vector<1x1xf32>
    %cst_95 = arith.constant 2.000000e+00 : f32
    %198 = vector.broadcast %cst_95 : f32 to vector<1x1xf32>
    %199 = arith.subf %198, %197 : vector<1x1xf32>
    %200 = arith.mulf %196, %199 : vector<1x1xf32>
    %201 = vector.broadcast %200 : vector<1x1xf32> to vector<1x8xf32>
    %202 = arith.mulf %193, %201 : vector<1x8xf32>
    %cst_96 = arith.constant dense<0.000000e+00> : vector<1x8xf32>
    %203 = tpu.matmul %202, %187, %cst_96 {dimension_numbers = #tpu.dot_dimension_numbers<[1], [0], [0], [1], [0, 0, 1, 1], [], []>} : vector<1x8xf32>, vector<8x8xf32>, vector<1x8xf32> -> vector<1x8xf32>
    %c3_97 = arith.constant 3 : index
    %c1_98 = arith.constant 1 : index
    %c0_99 = arith.constant 0 : index
    %c0_100 = arith.constant 0 : index
    %204 = vector.load %arg8[%c3_97, %c1_98, %c0_99, %c0_100] : memref<4x2x1x8xf32, #tpu.memory_space<vmem>>, vector<1x1x1x8xf32>
    %205 = vector.shape_cast %204 : vector<1x1x1x8xf32> to vector<1x8xf32>
    %206 = vector.shape_cast %202 : vector<1x8xf32> to vector<1x1x1x8xf32>
    tpu.vector_store %arg8[%c3_97, %c1_98, %c0_99, %c0_100], %206 {strides = array<i32>} : memref<4x2x1x8xf32, #tpu.memory_space<vmem>>, vector<1x1x1x8xf32>,
    %c1_101 = arith.constant 1 : index
    %c0_102 = arith.constant 0 : index
    %c24_103 = arith.constant 24 : index
    %207 = vector.load %arg7[%c1_101, %c0_102, %c24_103] : memref<2x1x32xf32, #tpu.memory_space<vmem>>, vector<1x1x8xf32>
    %208 = vector.shape_cast %207 : vector<1x1x8xf32> to vector<1x8xf32>
    %209 = vector.shape_cast %203 : vector<1x8xf32> to vector<1x1x8xf32>
    tpu.vector_store %arg7[%c1_101, %c0_102, %c24_103], %209 {strides = array<i32>} : memref<2x1x32xf32, #tpu.memory_space<vmem>>, vector<1x1x8xf32>,
    return
  }
  func.func @transform_0(%arg0: i32) -> (i32, i32, i32) {
    %c0_i32 = arith.constant 0 : i32
    %c0_i32_0 = arith.constant 0 : i32
    %c0_i32_1 = arith.constant 0 : i32
    return %arg0, %c0_i32, %c0_i32_0 : i32, i32, i32
  }
  func.func @transform_1(%arg0: i32) -> (i32, i32, i32) {
    %c0_i32 = arith.constant 0 : i32
    %c0_i32_0 = arith.constant 0 : i32
    %c0_i32_1 = arith.constant 0 : i32
    return %arg0, %c0_i32, %c0_i32_0 : i32, i32, i32
  }
  func.func @transform_2(%arg0: i32) -> (i32, i32) {
    %c0_i32 = arith.constant 0 : i32
    %c0_i32_0 = arith.constant 0 : i32
    %c0_i32_1 = arith.constant 0 : i32
    return %c0_i32, %c0_i32_0 : i32, i32
  }
  func.func @transform_3(%arg0: i32) -> (i32, i32) {
    %c0_i32 = arith.constant 0 : i32
    %c0_i32_0 = arith.constant 0 : i32
    %c0_i32_1 = arith.constant 0 : i32
    return %c0_i32, %c0_i32_0 : i32, i32
  }
  func.func @transform_4(%arg0: i32) -> (i32, i32) {
    %c0_i32 = arith.constant 0 : i32
    %c0_i32_0 = arith.constant 0 : i32
    %c0_i32_1 = arith.constant 0 : i32
    return %c0_i32, %c0_i32_0 : i32, i32
  }
  func.func @transform_5(%arg0: i32) -> (i32, i32) {
    %c0_i32 = arith.constant 0 : i32
    %c0_i32_0 = arith.constant 0 : i32
    %c0_i32_1 = arith.constant 0 : i32
    return %c0_i32, %c0_i32_0 : i32, i32
  }
  func.func @transform_6(%arg0: i32) -> (i32, i32, i32) {
    %c0_i32 = arith.constant 0 : i32
    %c0_i32_0 = arith.constant 0 : i32
    %c0_i32_1 = arith.constant 0 : i32
    return %arg0, %c0_i32, %c0_i32_0 : i32, i32, i32
  }
  func.func @transform_7(%arg0: i32) -> (i32, i32, i32, i32) {
    %c0_i32 = arith.constant 0 : i32
    %c0_i32_0 = arith.constant 0 : i32
    %c0_i32_1 = arith.constant 0 : i32
    %c0_i32_2 = arith.constant 0 : i32
    return %c0_i32, %arg0, %c0_i32_0, %c0_i32_1 : i32, i32, i32, i32
  }
}

</mosaic_0001>

<bundles_post_ra>
// kernel: tpu_custom_call.1
= control target key start
LH: loop header
LB: loop body
LE: loop exit
PB: predicated region body
PF: predicated region fallthrough
CT: control target
= control target key end

     0   :  { %13 = vsyncpa [#allocation3], 0  ;;  %vm85_vm0 = vcmask 1043456   ;;  %s1045_s0 = inlined_call_operand.vmem [shape: f32[2,1,32], index: 0, kind: input, shape index: {}]   ;;  %s1046_s1 = inlined_call_operand.vmem [shape: f32[2,8,44], index: 1, kind: input, shape index: {}]   ;;  %s1047_s2 = inlined_call_operand.vmem [shape: f32[32,32], index: 2, kind: input, shape index: {}]   ;;  %s1048_s3 = inlined_call_operand.vmem [shape: f32[44,32], index: 3, kind: input, shape index: {}]   ;;  %s1049_s4 = inlined_call_operand.vmem [shape: f32[1,32], index: 4, kind: input, shape index: {}]   ;;  %s1050_s5 = inlined_call_operand.vmem [shape: f32[1,32], index: 5, kind: input, shape index: {}]   ;;  %s1051_s6 = inlined_call_operand.hbm [shape: f32[2,1,32], index: 6, kind: output, shape index: {0}]   ;;  %s1052_s7 = inlined_call_operand.hbm [shape: f32[4,2,1,8], index: 7, kind: output, shape index: {1}]  }
   0x1   :  { %v73_v0 = vld [vmem:[%s1048_s3 + $0x28] sm:$0xf]  ;;  %v72_v1 = vld [vmem:[%s1048_s3 + $0x20] sm:$0xff]  ;;  %v34_v2 = vld [vmem:[%s1047_s2 + $0x18] sm:$0xff] }
   0x2   :  { %724 = vmatpush.msk.msra.mxu1 %vm85_vm0, %v73_v0  ;;  %v71_v3 = vld [vmem:[%s1048_s3 + $0x18] sm:$0xff]  ;;  %60 = vmatpush.msra.mxu0 %v34_v2  ;;  %v33_v4 = vld [vmem:[%s1047_s2 + $0x10] sm:$0xff]  ;;  %v32_v6 = vld [vmem:[%s1047_s2 + $0x8] sm:$0xff] }
   0x3   :  { %v70_v5 = vld [vmem:[%s1048_s3 + $0x10] sm:$0xff]  ;;  %v27_v7 = vld [vmem:[%s1045_s0] sm:$0x1]  ;;  %v28_v8 = vld [vmem:[%s1045_s0 + $0x1] sm:$0x1] }
   0x4   :  { %100 = vmatpush.msra.mxu1 %v72_v1  ;;  %61 = vmatpush.msra.mxu0 %v33_v4  ;;  %41 = vst [vmem:[#allocation1] ss:$9 sm:$0xff] %v27_v7  ;;  %v31_v9 = vld [vmem:[%s1047_s2] sm:$0xff]  ;;  %v69_v10 = vld [vmem:[%s1048_s3 + $0x8] sm:$0xff] }
   0x5   :  { %43 = vst [vmem:[#allocation1 + $0x1] ss:$9 sm:$0xff] %v28_v8 }
   0x6   :  { %101 = vmatpush.msra.mxu1 %v71_v3  ;;  %62 = vmatpush.msra.mxu0 %v32_v6 }
   0x7   :  { %14 = vsyncpa [#allocation5], 0  ;;  %v68_v11 = vld [vmem:[%s1048_s3] sm:$0xff]  ;;  %vm78_vm1 = vcmask 359424   ;;  %vm45_vm2 = vcmask 261120   ;;  %vm112_vm3 = vcmask 64512  }
   0x8   :  { %102 = vmatpush.msra.mxu1 %v70_v5  ;;  %63 = vmatpush.msra.mxu0 %v31_v9  ;;  %v29_v12 = vld [vmem:[%s1046_s1] sm:$0xff]  ;;  %s846_s28 = smov 112   ;;  %s847_s29 = smov 120   ;;  %vm139_vm4 = vcmask 57344   ;;  %v30_v33 = vld [vmem:[%s1046_s1 + $0x8] sm:$0xff]  ;;  %vm251_vm5 = vcmask 122944  }
   0x9   :  { %v938_v14 = vld [vmem:[%s1050_s5] ss:$0 sm:$0xff]  ;;  %s848_s1 = smov 104   ;;  %s849_s30 = smov 8   ;;  %vm325_vm6 = vcmask 188544   ;;  %vm399_vm7 = vcmask 254144  }
   0xa   :  { %103 = vmatpush.msra.mxu1 %v69_v10  ;;  %v761_v15 = vld [vmem:[%s1049_s4] ss:$0 sm:$0xff]  ;;  %s850_s8 = smov 16   ;;  %s851_s9 = smov 24  }
   0xb   :  { %s852_s10 = smov [#allocation4]   ;;  %s706_s14 = sshll.u32 %s1052_s7, 4  ;;  %s707_s14 = int_to_ptr.hbm [resolvable:$true] %s706_s14 }
   0xc   :  { %104 = vmatpush.msra.mxu1 %v68_v11  ;;  %v44_v13 = vld [vmem:[#allocation1] sm:$0xff]  ;;  %s704_s11 = sshll.u32 %s852_s10, 4  ;;  %s853_s15 = smov 1   ;;  %s705_s11 = int_to_ptr.vmem [resolvable:$true] %s704_s11 }
   0xd   :  { %725 = vmatmul.msk.f32.vlgmr.msra.gmra.mxu1 %vm78_vm1, %v29_v12  ;;  %723 = vmatmul.msk.f32.vlgmr.msra.gmra.mxu0 %vm45_vm2, %v44_v13  ;;  %s854_s16 = smov [#allocation2]   ;;  %s693_s19 = sshll.u32 %s1051_s6, 4  ;;  %s694_s19 = int_to_ptr.hbm [resolvable:$true] %s693_s19 }
   0xe   :  { %s691_s7 = sshll.u32 %s854_s16, 4  ;;  %s692_s7 = int_to_ptr.vmem [resolvable:$true] %s691_s7 }
  0x15   :  { %726 = vmatmul.msk.f32.gmra.mxu1 %vm78_vm1, %v30_v33 }
  0x8a   :  { %v106_v16 = vpop.f32.mrf.mxu1  ;;  %v65_v18 = vpop.f32.mrf.mxu0 }
  0x8b   :  { %v944_v17 = vadd.f32 %v938_v14, %v106_v16  ;;  %v66_v19 = vadd.f32 %v761_v15, %v65_v18 }
  0x8d   :  { %255 = vrot.lane.b32.xlu2 %v944_v17, %s846_s28  ;;  %181 = vrot.lane.b32.xlu1 %v944_v17, %s847_s29  ;;  %v961_v27 = vrot.slane %v66_v19, 1 }
  0x8e   :  { %727 = vmatpush.xpose.msk.msra.mxu2 %vm112_vm3, %v944_v17  ;;  %172 = vmatpush.msra.mxu3 %v944_v17 }
  0x91   :  { %728 = vmatmul.msk.f32.vlgmr.msra.gmra.mxu2 %vm112_vm3, %v66_v19 }
  0x92   :  { %v109_v48 = vpop.f32.mrf.mxu1 }
  0x93   :  { %v110_v49 = vadd.f32 %v938_v14, %v109_v48 }
  0x95   :  { %253 = vrot.lane.b32.xlu2 %v66_v19, %s846_s28  ;;  %179 = vrot.lane.b32.xlu1 %v66_v19, %s847_s29 }
  0x96   :  { %459 = vmatpush.msrb.mxu1 %v110_v49 }
  0x9d   :  { %470 = vrot.lane.b32.xlu2 %v110_v49, %s847_s29 }
  0xe7   :  { %v256_v20 = vpop.permute.xlu2 %255 }
  0xe8   :  { %733 = vmatpush.xpose.msk.msrb.mxu0 %vm112_vm3, %v256_v20 }
  0xef   :  { %v254_v21 = vpop.permute.xlu2 %253 }
  0xf0   :  { %734 = vmatmul.msk.f32.vlgmr.msrb.gmra.mxu0 %vm112_vm3, %v254_v21 }
  0xf7   :  { %v471_v63 = vpop.permute.xlu2 %470 }
  0xff   :  { %v182_v22 = vpop.permute.xlu1 %181 }
 0x100   :  { %730 = vmatpush.xpose.msk.msrb.mxu3 %vm112_vm3, %v182_v22  ;;  %240 = vmatpush.msrb.mxu2 %v182_v22 }
 0x107   :  { %v180_v40 = vpop.permute.xlu1 %179 }
 0x114   :  { %v136_v23 = vpop.f32.mrf.mxu2 }
 0x115   :  { %v140_v24 = vsel %vm139_vm4, %v136_v23, -inf }
 0x116   :  { %141 = vmax.xlane.f32.xlu0 %v140_v24 }
 0x16d   :  { %v278_v25 = vpop.f32.mrf.mxu0 }
 0x16e   :  { %v281_v26 = vsel %vm139_vm4, %v278_v25, -inf }
 0x16f   :  { %282 = vmax.xlane.f32.xlu1 %v281_v26 }
 0x188   :  { %468 = vrot.lane.b32.xlu1 %v961_v27, %s847_s29 }
 0x189   :  { %v142_v28 = vpop.xlane.xlu0 %141 }
 0x18a   :  { %v143_v29 = vsub.f32 %v136_v23, %v142_v28 }
 0x18c   :  { %v144_v30 = vmul.f32 1.442695, %v143_v29 }
 0x18e   :  { %762 = vpow2.f32 %v144_v30 }
 0x194   :  { %v763_v31 = vpop.eup %762 }
 0x195   :  { %v146_v32 = vsel %vm139_vm4, %v763_v31, 0.0 }
 0x196   :  { %147 = vadd.xlane.f32.xlu0 %v146_v32 }
 0x1e2   :  { %v283_v41 = vpop.xlane.xlu1 %282 }
 0x1e3   :  { %v284_v42 = vsub.f32 %v278_v25, %v283_v41 }
 0x1e5   :  { %v285_v44 = vmul.f32 1.442695, %v284_v42 }
 0x1fa   :  { %v469_v11 = vpop.permute.xlu1 %468 }
 0x209   :  { %v148_v34 = vpop.xlane.xlu0 %147 }
 0x20a   :  { %764 = vrcp.f32 %v148_v34 }
 0x20b   :  { %766 = vpow2.f32 %v285_v44 }
 0x210   :  { %v765_v35 = vpop.eup %764 }
 0x211   :  { %v150_v36 = vmul.f32 %v765_v35, %v148_v34  ;;  %v767_v47 = vpop.eup %766 }
 0x212   :  { %v287_v50 = vsel %vm139_vm4, %v767_v47, 0.0 }
 0x213   :  { %v151_v37 = vsub.f32 2.0, %v150_v36 }
 0x215   :  { %v152_v38 = vmul.f32 %v765_v35, %v151_v37 }
 0x217   :  { %v153_v39 = vmul.f32 %v763_v31, %v152_v38 }
 0x219   :  { %729 = vmatmul.msk.f32.vlgmr.msra.gmra.mxu3 %vm112_vm3, %v153_v39  ;;  %177 = vst.msk [vmem:[#allocation4] sm:$0x1] %vm139_vm4, %v153_v39 }
 0x21a   :  { %314 = vmatpush.msra.mxu3 %v256_v20 }
 0x221   :  { %731 = vmatmul.msk.f32.vlgmr.msrb.gmra.mxu3 %vm112_vm3, %v180_v40 }
 0x222   :  { %739 = vmatpush.xpose.msk.msrb.mxu3 %vm112_vm3, %v110_v49 }
 0x29c   :  { %v174_v43 = vpop.f32.mrf.mxu3 }
 0x29d   :  { %178 = vst.msk [vmem:[#allocation2] sm:$0x1] %vm139_vm4, %v174_v43 }
 0x2a4   :  { %v204_v45 = vpop.f32.mrf.mxu3 }
 0x2a5   :  { %v207_v46 = vsel %vm139_vm4, %v204_v45, -inf }
 0x2a6   :  { %208 = vmax.xlane.f32.xlu0 %v207_v46 }
 0x2ae   :  { %288 = vadd.xlane.f32.xlu0 %v287_v50 }
 0x2c2   :  { %329 = vrot.lane.b32.xlu0 %v944_v17, %s848_s1 }
 0x2ca   :  { %327 = vrot.lane.b32.xlu0 %v66_v19, %s848_s1 }
 0x2d2   :  { %543 = vrot.lane.b32.xlu0 %v110_v49, %s846_s28 }
 0x2da   :  { %616 = vrot.lane.b32.xlu0 %v110_v49, %s848_s1 }
 0x2e2   :  { %541 = vrot.lane.b32.xlu0 %v961_v27, %s846_s28 }
 0x319   :  { %v209_v51 = vpop.xlane.xlu0 %208 }
 0x31a   :  { %v210_v52 = vsub.f32 %v204_v45, %v209_v51 }
 0x31c   :  { %v211_v53 = vmul.f32 1.442695, %v210_v52 }
 0x31e   :  { %768 = vpow2.f32 %v211_v53 }
 0x321   :  { %v289_v54 = vpop.xlane.xlu0 %288 }
 0x322   :  { %770 = vrcp.f32 %v289_v54 }
 0x324   :  { %v769_v55 = vpop.eup %768 }
 0x325   :  { %v213_v56 = vsel %vm139_vm4, %v769_v55, 0.0 }
 0x326   :  { %214 = vadd.xlane.f32.xlu2 %v213_v56 }
 0x328   :  { %v771_v57 = vpop.eup %770 }
 0x329   :  { %v291_v58 = vmul.f32 %v771_v57, %v289_v54 }
 0x32b   :  { %v292_v59 = vsub.f32 2.0, %v291_v58 }
 0x32d   :  { %v293_v60 = vmul.f32 %v771_v57, %v292_v59 }
 0x32f   :  { %v294_v61 = vmul.f32 %v767_v47, %v293_v60 }
 0x331   :  { %320 = vst.msk [vmem:[#allocation4 + $0x4] sm:$0x1] %vm139_vm4, %v294_v61  ;;  %735 = vmatmul.msk.f32.vlgmr.msra.gmra.mxu3 %vm112_vm3, %v294_v61 }
 0x334   :  { %v330_v62 = vpop.permute.xlu0 %329 }
 0x335   :  { %736 = vmatpush.xpose.msk.msra.mxu2 %vm112_vm3, %v330_v62  ;;  %388 = vmatpush.msra.mxu0 %v330_v62 }
 0x337   :  { %529 = vmatpush.msrb.mxu0 %v471_v63 }
 0x339   :  { %740 = vmatmul.msk.f32.vlgmr.msrb.gmra.mxu3 %vm112_vm3, %v961_v27 }
 0x33c   :  { %v328_v0 = vpop.permute.xlu0 %327 }
 0x33e   :  { %614 = vrot.lane.b32.xlu2 %v961_v27, %s848_s1 }
 0x344   :  { %v544_v1 = vpop.permute.xlu0 %543 }
 0x345   :  { %745 = vmatpush.xpose.msk.msra.mxu3 %vm112_vm3, %v544_v1  ;;  %602 = vmatpush.msra.mxu1 %v544_v1 }
 0x34c   :  { %v991_v2 = vpop.permute.xlu0 %616 }
 0x354   :  { %v542_v3 = vpop.permute.xlu0 %541 }
 0x355   :  { %746 = vmatmul.msk.f32.vlgmr.msra.gmra.mxu3 %vm112_vm3, %v542_v3 }
 0x399   :  { %v215_v4 = vpop.xlane.xlu2 %214 }
 0x39a   :  { %772 = vrcp.f32 %v215_v4 }
 0x3a0   :  { %v773_v5 = vpop.eup %772 }
 0x3a1   :  { %v217_v6 = vmul.f32 %v773_v5, %v215_v4  ;;  %v615_v14 = vpop.permute.xlu2 %614 }
 0x3a3   :  { %v218_v7 = vsub.f32 2.0, %v217_v6 }
 0x3a5   :  { %v219_v8 = vmul.f32 %v773_v5, %v218_v7 }
 0x3a7   :  { %v220_v9 = vmul.f32 %v769_v55, %v219_v8 }
 0x3a9   :  { %246 = vst.msk [vmem:[#allocation4 + $0x2] sm:$0x1] %vm139_vm4, %v220_v9  ;;  %732 = vmatmul.msk.f32.vlgmr.msrb.gmra.mxu2 %vm112_vm3, %v220_v9 }
 0x3aa   :  { %742 = vmatpush.xpose.msk.msrb.mxu2 %vm112_vm3, %v471_v63 }
 0x3b1   :  { %737 = vmatmul.msk.f32.vlgmr.msra.gmra.mxu2 %vm112_vm3, %v328_v0 }
 0x3b2   :  { %748 = vmatpush.xpose.msk.msra.mxu2 %vm112_vm3, %v991_v2 }
 0x3b4   :  { %v1000_v10 = vpop.f32.mrf.mxu3 }
 0x3b9   :  { %743 = vmatmul.msk.f32.vlgmr.msrb.gmra.mxu2 %vm112_vm3, %v469_v11 }
 0x3bc   :  { %v424_v12 = vpop.f32.mrf.mxu3 }
 0x3bd   :  { %v427_v13 = vsel %vm139_vm4, %v424_v12, -inf }
 0x3be   :  { %428 = vmax.xlane.f32.xlu0 %v427_v13 }
 0x3c1   :  { %749 = vmatmul.msk.f32.vlgmr.msra.gmra.mxu2 %vm112_vm3, %v615_v14 }
 0x3d8   :  { %v566_v21 = vpop.f32.mrf.mxu3 }
 0x3d9   :  { %v569_v24 = vsel %vm139_vm4, %v566_v21, -inf }
 0x42c   :  { %v242_v15 = vpop.f32.mrf.mxu2 }
 0x431   :  { %v429_v16 = vpop.xlane.xlu0 %428 }
 0x432   :  { %v430_v17 = vsub.f32 %v424_v12, %v429_v16 }
 0x434   :  { %v352_v18 = vpop.f32.mrf.mxu2  ;;  %v431_v20 = vmul.f32 1.442695, %v430_v17 }
 0x435   :  { %v355_v19 = vsel %vm139_vm4, %v352_v18, -inf }
 0x436   :  { %356 = vmax.xlane.f32.xlu1 %v355_v19  ;;  %774 = vpow2.f32 %v431_v20 }
 0x43c   :  { %v493_v22 = vpop.f32.mrf.mxu2  ;;  %v775_v25 = vpop.eup %774 }
 0x43d   :  { %v496_v23 = vsel %vm139_vm4, %v493_v22, -inf  ;;  %v433_v28 = vsel %vm139_vm4, %v775_v25, 0.0 }
 0x43e   :  { %497 = vmax.xlane.f32.xlu2 %v496_v23  ;;  %570 = vmax.xlane.f32.xlu1 %v569_v24 }
 0x444   :  { %v639_v26 = vpop.f32.mrf.mxu2 }
 0x445   :  { %v642_v27 = vsel %vm139_vm4, %v639_v26, -inf }
 0x446   :  { %643 = vmax.xlane.f32.xlu0 %v642_v27  ;;  %434 = vadd.xlane.f32.xlu1 %v433_v28 }
 0x4a9   :  { %v357_v29 = vpop.xlane.xlu1 %356 }
 0x4aa   :  { %v358_v30 = vsub.f32 %v352_v18, %v357_v29 }
 0x4ac   :  { %v359_v31 = vmul.f32 1.442695, %v358_v30 }
 0x4ae   :  { %776 = vpow2.f32 %v359_v31 }
 0x4b1   :  { %v498_v32 = vpop.xlane.xlu2 %497  ;;  %v571_v33 = vpop.xlane.xlu1 %570 }
 0x4b2   :  { %v499_v34 = vsub.f32 %v493_v22, %v498_v32  ;;  %v572_v35 = vsub.f32 %v566_v21, %v571_v33 }
 0x4b4   :  { %v777_v36 = vpop.eup %776  ;;  %v500_v37 = vmul.f32 1.442695, %v499_v34  ;;  %v573_v38 = vmul.f32 1.442695, %v572_v35 }
 0x4b5   :  { %v361_v39 = vsel %vm139_vm4, %v777_v36, 0.0 }
 0x4b6   :  { %778 = vpow2.f32 %v500_v37  ;;  %362 = vadd.xlane.f32.xlu2 %v361_v39 }
 0x4b7   :  { %780 = vpow2.f32 %v573_v38 }
 0x4b9   :  { %v435_v40 = vpop.xlane.xlu1 %434  ;;  %v644_v41 = vpop.xlane.xlu0 %643 }
 0x4ba   :  { %782 = vrcp.f32 %v435_v40  ;;  %v645_v42 = vsub.f32 %v639_v26, %v644_v41 }
 0x4bc   :  { %v779_v43 = vpop.eup %778  ;;  %v646_v44 = vmul.f32 1.442695, %v645_v42 }
 0x4bd   :  { %v781_v45 = vpop.eup %780  ;;  %v502_v46 = vsel %vm139_vm4, %v779_v43, 0.0 }
 0x4be   :  { %784 = vpow2.f32 %v646_v44  ;;  %503 = vadd.xlane.f32.xlu0 %v502_v46  ;;  %v575_v47 = vsel %vm139_vm4, %v781_v45, 0.0 }
 0x4bf   :  { %576 = vadd.xlane.f32.xlu2 %v575_v47 }
 0x4c0   :  { %v783_v48 = vpop.eup %782 }
 0x4c1   :  { %v437_v49 = vmul.f32 %v783_v48, %v435_v40 }
 0x4c3   :  { %v438_v50 = vsub.f32 2.0, %v437_v49 }
 0x4c4   :  { %v785_v51 = vpop.eup %784 }
 0x4c5   :  { %v439_v52 = vmul.f32 %v783_v48, %v438_v50  ;;  %v648_v53 = vsel %vm139_vm4, %v785_v51, 0.0 }
 0x4c6   :  { %649 = vadd.xlane.f32.xlu1 %v648_v53 }
 0x4c7   :  { %v440_v54 = vmul.f32 %v775_v25, %v439_v52 }
 0x4c9   :  { %465 = vst.msk [vmem:[#allocation4 + $0x1] sm:$0x1] %vm139_vm4, %v440_v54  ;;  %741 = vmatmul.msk.f32.vlgmr.msrb.gmra.mxu1 %vm112_vm3, %v440_v54 }
 0x4d2   :  { %248 = vrot.lane.b32.xlu0 %v242_v15, %s849_s30 }
 0x4d7   :  { %322 = vrot.lane.b32.xlu2 %v1000_v10, %s850_s8 }
 0x529   :  { %v363_v55 = vpop.xlane.xlu2 %362 }
 0x52a   :  { %786 = vrcp.f32 %v363_v55 }
 0x530   :  { %v787_v56 = vpop.eup %786 }
 0x531   :  { %v365_v57 = vmul.f32 %v787_v56, %v363_v55  ;;  %v504_v58 = vpop.xlane.xlu0 %503 }
 0x532   :  { %v577_v59 = vpop.xlane.xlu2 %576  ;;  %788 = vrcp.f32 %v504_v58 }
 0x533   :  { %v366_v60 = vsub.f32 2.0, %v365_v57  ;;  %790 = vrcp.f32 %v577_v59 }
 0x535   :  { %v367_v61 = vmul.f32 %v787_v56, %v366_v60 }
 0x537   :  { %v368_v62 = vmul.f32 %v777_v36, %v367_v61 }
 0x538   :  { %v789_v63 = vpop.eup %788 }
 0x539   :  { %v791_v0 = vpop.eup %790  ;;  %394 = vst.msk [vmem:[#allocation4 + $0x6] sm:$0x1] %vm139_vm4, %v368_v62  ;;  %v506_v1 = vmul.f32 %v789_v63, %v504_v58  ;;  %738 = vmatmul.msk.f32.vlgmr.msra.gmra.mxu0 %vm112_vm3, %v368_v62  ;;  %v650_v3 = vpop.xlane.xlu1 %649 }
 0x53a   :  { %v579_v4 = vmul.f32 %v791_v0, %v577_v59  ;;  %675 = vmatpush.msra.mxu0 %v991_v2  ;;  %792 = vrcp.f32 %v650_v3  ;;  %v323_v14 = vpop.permute.xlu2 %322 }
 0x53b   :  { %v507_v5 = vsub.f32 2.0, %v506_v1 }
 0x53c   :  { %v580_v6 = vsub.f32 2.0, %v579_v4 }
 0x53d   :  { %v508_v7 = vmul.f32 %v789_v63, %v507_v5 }
 0x53e   :  { %v581_v8 = vmul.f32 %v791_v0, %v580_v6 }
 0x53f   :  { %v509_v9 = vmul.f32 %v779_v43, %v508_v7 }
 0x540   :  { %v793_v10 = vpop.eup %792  ;;  %v582_v11 = vmul.f32 %v781_v45, %v581_v8 }
 0x541   :  { %535 = vst.msk [vmem:[#allocation4 + $0x3] sm:$0x1] %vm139_vm4, %v509_v9  ;;  %v652_v12 = vmul.f32 %v793_v10, %v650_v3  ;;  %744 = vmatmul.msk.f32.vlgmr.msrb.gmra.mxu0 %vm112_vm3, %v509_v9 }
 0x542   :  { %608 = vst.msk [vmem:[#allocation4 + $0x5] sm:$0x1] %vm139_vm4, %v582_v11  ;;  %747 = vmatmul.msk.f32.vlgmr.msra.gmra.mxu1 %vm112_vm3, %v582_v11 }
 0x543   :  { %v653_v13 = vsub.f32 2.0, %v652_v12 }
 0x544   :  { %v249_v2 = vpop.permute.xlu0 %248 }
 0x545   :  { %v654_v15 = vmul.f32 %v793_v10, %v653_v13  ;;  %252 = vst.msk [vmem:[#allocation2] sm:$0x1] %vm251_vm5, %v249_v2 }
 0x546   :  { %v461_v16 = vpop.f32.mrf.mxu1  ;;  %326 = vst.msk [vmem:[#allocation2] sm:$0x1] %vm325_vm6, %v323_v14 }
 0x547   :  { %v655_v17 = vmul.f32 %v785_v51, %v654_v15  ;;  %467 = vst.msk [vmem:[#allocation2 + $0x1] sm:$0x1] %vm139_vm4, %v461_v16 }
 0x549   :  { %681 = vst.msk [vmem:[#allocation4 + $0x7] sm:$0x1] %vm139_vm4, %v655_v17  ;;  %750 = vmatmul.msk.f32.vlgmr.msra.gmra.mxu0 %vm112_vm3, %v655_v17 }
 0x54a   :  { %712 = dma.vmem_to_hbm [thread:$0]  %s705_s11, 128, %s707_s14, [#allocation5], %s850_s8, %s850_s8, %s853_s15  }
 0x5b6   :  { %v390_v18 = vpop.f32.mrf.mxu0 }
 0x5b7   :  { %396 = vrot.lane.b32.xlu1 %v390_v18, %s851_s9 }
 0x5be   :  { %v531_v19 = vpop.f32.mrf.mxu0 }
 0x5bf   :  { %537 = vrot.lane.b32.xlu0 %v531_v19, %s849_s30  ;;  %v604_v20 = vpop.f32.mrf.mxu1 }
 0x5c6   :  { %v677_v21 = vpop.f32.mrf.mxu0 }
 0x5c7   :  { %610 = vrot.lane.b32.xlu0 %v604_v20, %s850_s8  ;;  %683 = vrot.lane.b32.xlu2 %v677_v21, %s851_s9 }
 0x621   :  { %v684_v25 = vpop.permute.xlu2 %683 }
 0x629   :  { %v397_v22 = vpop.permute.xlu1 %396 }
 0x62a   :  { %400 = vst.msk [vmem:[#allocation2] sm:$0x1] %vm399_vm7, %v397_v22 }
 0x631   :  { %v538_v23 = vpop.permute.xlu0 %537 }
 0x632   :  { %540 = vst.msk [vmem:[#allocation2 + $0x1] sm:$0x1] %vm251_vm5, %v538_v23 }
 0x639   :  { %v611_v24 = vpop.permute.xlu0 %610 }
 0x63a   :  { %613 = vst.msk [vmem:[#allocation2 + $0x1] sm:$0x1] %vm325_vm6, %v611_v24 }
 0x63b   :  { %686 = vst.msk [vmem:[#allocation2 + $0x1] sm:$0x1] %vm399_vm7, %v684_v25 }
 0x63c   :  { %699 = dma.vmem_to_hbm [thread:$0]  %s692_s7, 32, %s694_s19, [#allocation3], %s850_s8, %s850_s8, %s853_s15  }
 0x63d   :  { %842 = dma.done.wait [#allocation3], 32  }
 0x63e   :  { %843 = vsyncadd [#allocation3], 4294967264 }
 0x63f   :  { %844 = dma.done.wait [#allocation5], 128  }
 0x640   :  { %845 = vsyncadd [#allocation5], 4294967168 }
 0x641   :  { %721 = vsyncpa [#allocation3], 1 }
 0x642   :  { %722 = vsyncpa [#allocation5], 1 }

</bundles_post_ra>
